<compile_context>
chip_gen: v7x
topology: tpu7x:2x2x1
jax: 0.10.0
libtpu: 0.0.40
codegen_flags: <defaults>
</compile_context>

<pallas_src>
import jax
import jax.numpy as jnp
from jax.experimental import pallas as pl
from jax.experimental.pallas import tpu as pltpu

IN_DIM = 1568
H1 = 100
H2 = 20
OUT_DIM = 1

H1_PAD = 128   # lane-padded hidden widths
H2_PAD = 128
W3_ROWS = 8    # w3 stored as an (8, 128) slab; row 0 is real, rows 1-7 zero


def _round_up(a, m):
    return ((a + m - 1) // m) * m


def disc_f_kernel(x_ref, w1_ref, b1_ref, w2_ref, b2_ref, w3_ref, b3_ref, o_ref):
    # GradientReversal is identity on the forward pass.

    # Cast x to bf16 in-kernel (hides under the x DMA; no-op if already bf16).
    x = x_ref[...].astype(jnp.bfloat16)

    # Linear(1568, 100) + ReLU  (bf16 inputs, f32 MXU accumulate; 128 lanes)
    h1 = jnp.dot(x, w1_ref[...], preferred_element_type=jnp.float32)
    h1 = jnp.maximum(h1 + b1_ref[...], 0.0)

    # Linear(100, 20) + ReLU  (bf16 inputs, f32 accumulate; padded lanes stay 0)
    h2 = jnp.dot(h1.astype(jnp.bfloat16), w2_ref[...],
                 preferred_element_type=jnp.float32)
    h2 = jnp.maximum(h2 + b2_ref[...], 0.0)

    # Linear(20, 1): (8,128) @ (128, tb) -> (8, tb); row 0 is the real output.
    # Produces a lane-dense (1, tb) row (no masked (tb,1) column stores).
    out_rows = jnp.dot(w3_ref[...], h2.T, preferred_element_type=jnp.float32)
    o_ref[...] = (out_rows[0:1, :] + b3_ref[0]).astype(o_ref.dtype)


def pack_params(w1, b1, w2, b2, w3, b3):
    """Pad logical params to lane-dense kernel layout; cast w1/w2 to bf16."""
    w1p = jnp.zeros((IN_DIM, H1_PAD), jnp.float32).at[:, :H1].set(w1)
    w1p = w1p.astype(jnp.bfloat16)
    b1p = jnp.zeros((1, H1_PAD), jnp.float32).at[0, :H1].set(b1)
    w2p = jnp.zeros((H1_PAD, H2_PAD), jnp.float32).at[:H1, :H2].set(w2)
    w2p = w2p.astype(jnp.bfloat16)
    b2p = jnp.zeros((1, H2_PAD), jnp.float32).at[0, :H2].set(b2)
    w3p = jnp.zeros((W3_ROWS, H2_PAD), jnp.float32).at[0, :H2].set(w3[:, 0])
    b3p = jnp.reshape(b3, (1,)).astype(jnp.float32)
    return w1p, b1p, w2p, b2p, w3p, b3p


def disc_f_forward(x, packed_params, *, tile_b=1024, vmem_limit_bytes=32 * 1024 * 1024):
    """x: (B, 1568) float32 or bfloat16. Returns (B, 1) float32."""
    w1p, b1p, w2p, b2p, w3p, b3p = packed_params
    B = x.shape[0]

    # Batch tile: multiple of 8 sublanes; capped so nb >= 2 when possible so the
    # "parallel" grid axis can shard across both v7x TensorCores.
    tb = min(int(tile_b), _round_up(pl.cdiv(B, 2), 8))
    tb = max(8, _round_up(tb, 8))
    nb = pl.cdiv(B, tb)   # no jnp.pad: Pallas clips the tail block

    x_itemsize = jnp.dtype(x.dtype).itemsize
    flops = 2 * B * (IN_DIM * H1_PAD + H1_PAD * H2_PAD + W3_ROWS * H2_PAD)
    bytes_accessed = (
        B * IN_DIM * x_itemsize              # x (streamed once, as-is)
        + nb * tb * 4                        # output rows (f32)
        + IN_DIM * H1_PAD * 2                # w1 (bf16)
        + H1_PAD * H2_PAD * 2                # w2 (bf16)
        + (H1_PAD + H2_PAD + W3_ROWS * H2_PAD) * 4 + 4  # biases + w3 slab + b3
    )

    out = pl.pallas_call(
        disc_f_kernel,
        out_shape=jax.ShapeDtypeStruct((nb, 1, tb), jnp.float32),
        grid_spec=pltpu.PrefetchScalarGridSpec(
            num_scalar_prefetch=0,
            grid=(nb,),
            in_specs=[
                pl.BlockSpec((tb, IN_DIM), lambda i: (i, 0)),        # x: batch-tiled
                pl.BlockSpec((IN_DIM, H1_PAD), lambda i: (0, 0)),    # w1 (resident)
                pl.BlockSpec((1, H1_PAD), lambda i: (0, 0)),         # b1
                pl.BlockSpec((H1_PAD, H2_PAD), lambda i: (0, 0)),    # w2 (resident)
                pl.BlockSpec((1, H2_PAD), lambda i: (0, 0)),         # b2
                pl.BlockSpec((W3_ROWS, H2_PAD), lambda i: (0, 0)),   # w3 slab
                pl.BlockSpec(memory_space=pltpu.MemorySpace.SMEM),   # b3 scalar
            ],
            out_specs=pl.BlockSpec((None, 1, tb), lambda i: (i, 0, 0)),  # lane-dense row
        ),
        compiler_params=pltpu.CompilerParams(
            dimension_semantics=("parallel",),
            vmem_limit_bytes=int(vmem_limit_bytes),
        ),
        cost_estimate=pl.CostEstimate(
            flops=flops, transcendentals=0, bytes_accessed=bytes_accessed),
    )(x, w1p, b1p, w2p, b2p, w3p, b3p)

    # Tail rows (>= B) of the last block are undefined; slice them off here.
    return out.reshape(nb * tb)[:B].reshape(B, OUT_DIM)


def init_params(key):
    """Deterministic synthetic params matching nn.Linear shapes (stored as (in, out))."""
    keys = jax.random.split(key, 6)

    def linear(kw, kb, fan_in, fan_out):
        bound = 1.0 / jnp.sqrt(jnp.float32(fan_in))
        w = jax.random.uniform(kw, (fan_in, fan_out), jnp.float32, -bound, bound)
        b = jax.random.uniform(kb, (fan_out,), jnp.float32, -bound, bound)
        return w, b

    w1, b1 = linear(keys[0], keys[1], IN_DIM, H1)
    w2, b2 = linear(keys[2], keys[3], H1, H2)
    w3, b3 = linear(keys[4], keys[5], H2, OUT_DIM)
    return w1, b1, w2, b2, w3, b3


def reference_forward(x, w1, b1, w2, b2, w3, b3):
    # Mirror the kernel's bf16 rounding of x, w1, h1, w2 (f32 accumulate).
    xb = x.astype(jnp.bfloat16).astype(jnp.float32)
    w1b = w1.astype(jnp.bfloat16).astype(jnp.float32)
    h1 = jnp.maximum(xb @ w1b + b1, 0.0)
    h1b = h1.astype(jnp.bfloat16).astype(jnp.float32)
    w2b = w2.astype(jnp.bfloat16).astype(jnp.float32)
    h2 = jnp.maximum(h1b @ w2b + b2, 0.0)
    return h2 @ w3 + b3


if __name__ == "__main__":
    key = jax.random.PRNGKey(0)
    k_x, k_p = jax.random.split(key)

    # Small batch that is NOT a multiple of the tile -> exercises the no-pad
    # tail block and a multi-iteration (pipelined, parallel) grid.
    B = 20
    x = jax.random.normal(k_x, (B, IN_DIM), jnp.float32)
    params = init_params(k_p)
    packed = pack_params(*params)

    out = disc_f_forward(x, packed, tile_b=8)
    out = jax.block_until_ready(out)

    ref = reference_forward(x, *params)
    assert out.shape == (B, OUT_DIM), out.shape
    max_err = float(jnp.max(jnp.abs(out - ref)))
    assert jnp.allclose(out, ref, atol=2e-3, rtol=2e-3), max_err

    print("KERNEL_OK")
</pallas_src>

<mosaic_0001>
module attributes {stable_mosaic.version = 11 : i64} {
  func.func @disc_f_kernel(%arg0: i32, %arg1: memref<8x1568xf32, #tpu.memory_space<vmem>>, %arg2: memref<1568x128xbf16, #tpu.memory_space<vmem>>, %arg3: memref<1x128xf32, #tpu.memory_space<vmem>>, %arg4: memref<128x128xbf16, #tpu.memory_space<vmem>>, %arg5: memref<1x128xf32, #tpu.memory_space<vmem>>, %arg6: memref<8x128xf32, #tpu.memory_space<vmem>>, %arg7: memref<1xf32, #tpu.memory_space<smem>>, %arg8: memref<1x1x8xf32, #tpu.memory_space<vmem>>) attributes {dimension_semantics = [#tpu.dimension_semantics<parallel>], iteration_bounds = array<i64: 3>, scalar_prefetch = 0 : i64, scratch_operands = 0 : i64, tpu.core_type = #tpu.core_type<tc>, window_params = [{transform_indices = @transform_0, window_bounds = array<i64: 8, 1568>}, {pipeline_mode = #tpu.pipeline_mode<synchronous>, transform_indices = @transform_1, window_bounds = array<i64: 1568, 128>}, {pipeline_mode = #tpu.pipeline_mode<synchronous>, transform_indices = @transform_2, window_bounds = array<i64: 1, 128>}, {pipeline_mode = #tpu.pipeline_mode<synchronous>, transform_indices = @transform_3, window_bounds = array<i64: 128, 128>}, {pipeline_mode = #tpu.pipeline_mode<synchronous>, transform_indices = @transform_4, window_bounds = array<i64: 1, 128>}, {pipeline_mode = #tpu.pipeline_mode<synchronous>, transform_indices = @transform_5, window_bounds = array<i64: 8, 128>}, {transform_indices = @transform_6, window_bounds = array<i64: 1>}, {transform_indices = @transform_7, window_bounds = array<i64: 1, 1, 8>}]} {
    %c0 = arith.constant 0 : index
    %c0_0 = arith.constant 0 : index
    %0 = vector.load %arg1[%c0, %c0_0] : memref<8x1568xf32, #tpu.memory_space<vmem>>, vector<8x1568xf32>
    %1 = arith.truncf %0 : vector<8x1568xf32> to vector<8x1568xbf16>
    %c0_1 = arith.constant 0 : index
    %c0_2 = arith.constant 0 : index
    %2 = vector.load %arg2[%c0_1, %c0_2] : memref<1568x128xbf16, #tpu.memory_space<vmem>>, vector<1568x128xbf16>
    %cst = arith.constant dense<0.000000e+00> : vector<8x128xf32>
    %3 = tpu.matmul %1, %2, %cst {dimension_numbers = #tpu.dot_dimension_numbers<[1], [0], [0], [1], [0, 0, 1, 1], [], []>} : vector<8x1568xbf16>, vector<1568x128xbf16>, vector<8x128xf32> -> vector<8x128xf32>
    %c0_3 = arith.constant 0 : index
    %c0_4 = arith.constant 0 : index
    %4 = vector.load %arg3[%c0_3, %c0_4] : memref<1x128xf32, #tpu.memory_space<vmem>>, vector<1x128xf32>
    %5 = vector.broadcast %4 : vector<1x128xf32> to vector<8x128xf32>
    %6 = arith.addf %3, %5 : vector<8x128xf32>
    %cst_5 = arith.constant 0.000000e+00 : f32
    %7 = vector.broadcast %cst_5 : f32 to vector<8x128xf32>
    %8 = arith.maximumf %6, %7 : vector<8x128xf32>
    %9 = arith.truncf %8 : vector<8x128xf32> to vector<8x128xbf16>
    %c0_6 = arith.constant 0 : index
    %c0_7 = arith.constant 0 : index
    %10 = vector.load %arg4[%c0_6, %c0_7] : memref<128x128xbf16, #tpu.memory_space<vmem>>, vector<128x128xbf16>
    %cst_8 = arith.constant dense<0.000000e+00> : vector<8x128xf32>
    %11 = tpu.matmul %9, %10, %cst_8 {dimension_numbers = #tpu.dot_dimension_numbers<[1], [0], [0], [1], [0, 0, 1, 1], [], []>} : vector<8x128xbf16>, vector<128x128xbf16>, vector<8x128xf32> -> vector<8x128xf32>
    %c0_9 = arith.constant 0 : index
    %c0_10 = arith.constant 0 : index
    %12 = vector.load %arg5[%c0_9, %c0_10] : memref<1x128xf32, #tpu.memory_space<vmem>>, vector<1x128xf32>
    %13 = vector.broadcast %12 : vector<1x128xf32> to vector<8x128xf32>
    %14 = arith.addf %11, %13 : vector<8x128xf32>
    %cst_11 = arith.constant 0.000000e+00 : f32
    %15 = vector.broadcast %cst_11 : f32 to vector<8x128xf32>
    %16 = arith.maximumf %14, %15 : vector<8x128xf32>
    %c0_12 = arith.constant 0 : index
    %c0_13 = arith.constant 0 : index
    %17 = vector.load %arg6[%c0_12, %c0_13] : memref<8x128xf32, #tpu.memory_space<vmem>>, vector<8x128xf32>
    %18 = tpu.transpose %16, [1, 0] : vector<8x128xf32> -> vector<128x8xf32>
    %cst_14 = arith.constant dense<0.000000e+00> : vector<8x8xf32>
    %19 = tpu.matmul %17, %18, %cst_14 {dimension_numbers = #tpu.dot_dimension_numbers<[1], [0], [0], [1], [0, 0, 1, 1], [], []>} : vector<8x128xf32>, vector<128x8xf32>, vector<8x8xf32> -> vector<8x8xf32>
    %20 = vector.extract_strided_slice %19 {offsets = [0, 0], sizes = [1, 8], strides = [1, 1]} : vector<8x8xf32> to vector<1x8xf32>
    %c0_15 = arith.constant 0 : index
    %21 = memref.load %arg7[%c0_15] : memref<1xf32, #tpu.memory_space<smem>>
    %22 = vector.broadcast %21 : f32 to vector<1x8xf32>
    %23 = arith.addf %20, %22 : vector<1x8xf32>
    %c0_16 = arith.constant 0 : index
    %c0_17 = arith.constant 0 : index
    %c0_18 = arith.constant 0 : index
    %24 = vector.load %arg8[%c0_16, %c0_17, %c0_18] : memref<1x1x8xf32, #tpu.memory_space<vmem>>, vector<1x1x8xf32>
    %25 = vector.shape_cast %24 : vector<1x1x8xf32> to vector<1x8xf32>
    %26 = vector.shape_cast %23 : vector<1x8xf32> to vector<1x1x8xf32>
    tpu.vector_store %arg8[%c0_16, %c0_17, %c0_18], %26 {strides = array<i32>} : memref<1x1x8xf32, #tpu.memory_space<vmem>>, vector<1x1x8xf32>,
    return
  }
  func.func @transform_0(%arg0: i32) -> (i32, i32) {
    %c0_i32 = arith.constant 0 : i32
    %c0_i32_0 = arith.constant 0 : i32
    return %arg0, %c0_i32 : i32, i32
  }
  func.func @transform_1(%arg0: i32) -> (i32, i32) {
    %c0_i32 = arith.constant 0 : i32
    %c0_i32_0 = arith.constant 0 : i32
    %c0_i32_1 = arith.constant 0 : i32
    return %c0_i32, %c0_i32_0 : i32, i32
  }
  func.func @transform_2(%arg0: i32) -> (i32, i32) {
    %c0_i32 = arith.constant 0 : i32
    %c0_i32_0 = arith.constant 0 : i32
    %c0_i32_1 = arith.constant 0 : i32
    return %c0_i32, %c0_i32_0 : i32, i32
  }
  func.func @transform_3(%arg0: i32) -> (i32, i32) {
    %c0_i32 = arith.constant 0 : i32
    %c0_i32_0 = arith.constant 0 : i32
    %c0_i32_1 = arith.constant 0 : i32
    return %c0_i32, %c0_i32_0 : i32, i32
  }
  func.func @transform_4(%arg0: i32) -> (i32, i32) {
    %c0_i32 = arith.constant 0 : i32
    %c0_i32_0 = arith.constant 0 : i32
    %c0_i32_1 = arith.constant 0 : i32
    return %c0_i32, %c0_i32_0 : i32, i32
  }
  func.func @transform_5(%arg0: i32) -> (i32, i32) {
    %c0_i32 = arith.constant 0 : i32
    %c0_i32_0 = arith.constant 0 : i32
    %c0_i32_1 = arith.constant 0 : i32
    return %c0_i32, %c0_i32_0 : i32, i32
  }
  func.func @transform_6(%arg0: i32) -> i32 {
    %c0_i32 = arith.constant 0 : i32
    %c0_i32_0 = arith.constant 0 : i32
    return %c0_i32 : i32
  }
  func.func @transform_7(%arg0: i32) -> (i32, i32, i32) {
    %c0_i32 = arith.constant 0 : i32
    %c0_i32_0 = arith.constant 0 : i32
    %c0_i32_1 = arith.constant 0 : i32
    return %arg0, %c0_i32, %c0_i32_0 : i32, i32, i32
  }
}

</mosaic_0001>

<bundles_post_ra>
// kernel: tpu_custom_call.1
= control target key start
LH: loop header
LB: loop body
LE: loop exit
PB: predicated region body
PF: predicated region fallthrough
CT: control target
= control target key end

     0   :  { %s2648_s0 = inlined_call_operand.hbm [shape: f32[20,1568], index: 0, kind: input, shape index: {}]   ;;  %s2649_s1 = inlined_call_operand.hbm [shape: bf16[1568,128], index: 1, kind: input, shape index: {}]   ;;  %s2650_s2 = inlined_call_operand.vmem [shape: f32[1,128], index: 2, kind: input, shape index: {}]   ;;  %s2651_s3 = inlined_call_operand.hbm [shape: bf16[128,128], index: 3, kind: input, shape index: {}]   ;;  %s2652_s4 = inlined_call_operand.vmem [shape: f32[1,128], index: 4, kind: input, shape index: {}]   ;;  %s2653_s5 = inlined_call_operand.vmem [shape: f32[8,128], index: 5, kind: input, shape index: {}]   ;;  %s2654_s6 = inlined_call_operand.<no memory space> [shape: f32[1], index: 6, kind: input, shape index: {}]   ;;  %s2655_s7 = inlined_call_operand.hbm [shape: f32[3,1,8], index: 7, kind: output, shape index: {}]  }
   0x1   :  { %12 = sst [smem:[#allocation2]] %s2654_s6 }
   0x2   :  { %13 = vsyncpa [#allocation4], 0 }
   0x3   :  { %15 = vsyncpa [#allocation4 + $0x1], 0 }
   0x4   :  { %16 = vsyncpa [#allocation7], 0 }
   0x5   :  { %17 = vsyncpa [#allocation5], 0 }
   0x6   :  { %19 = vsyncpa [#allocation5 + $0x1], 0  ;;  %s2403_s26 = smov 0   ;;  %s2405_s27 = smov 0  }
   0x7   :  { %s2407_s28 = smov 0   ;;  %s2409_s29 = smov 0  }
   0x8 LB: > { %s2424_s6 = sadd.s32 4294967295, %s2350_s29   ;;  %s1714_s30 = sadd.s32 4294967294, %s2350_s29   ;;  %s2350_s29 = sphi %s2409_s29, %s2674_s29   ;;  %s2346_s28 = sphi %s2407_s28, %s2673_s28   ;;  %s2342_s27 = sphi %s2405_s27, %s2672_s27   ;;  %s2338_s26 = sphi %s2403_s26, %s2671_s26  }
   0x9   : > { %p45_p0 = scmp.ne.s32.totalorder %s2342_s27, %s2338_s26  ;;  %p2656_p1 = scmp.eq.s32.totalorder %s2424_s6, 0 }
   0xa   : > { %p201_p3 = scmp.eq.s32.totalorder %s1714_s30, 2  ;;  %p1715_p5 = scmp.ge.s32.totalorder %s2350_s29, 1 }
   0xb   : > { %p2433_p4 = por %p2656_p1, %p45_p0  ;;  %p208_p7 = scmp.lt.s32.totalorder %s2350_s29, 4 }
   0xc   : > { %p2438_p6 = por %p201_p3, %p45_p0  ;;  %s2352_s11 = smov [#allocation6]  }
   0xd   : > { %s2659_s8 = scalar_select %p2433_p4, 1, 0 }
   0xe   : > { %s2660_s9 = scalar_select %p2438_p6, 1, 0 }
   0xf   : > { %p2443_p8 = pnand %p1715_p5, %p208_p7  ;;  %s220_s12 = sshll.u32 %s2352_s11, 4  ;;  %s221_s12 = int_to_ptr.vmem [resolvable:$true] %s220_s12 }
  0x10   : > { %s2353_s14 = smov [#allocation8]   ;;  %s2194_s18 = scalar_lea.hbm %s2649_s1, 12544 }
  0x11   : > { %s2661_s10 = scalar_select %p2443_p8, 1, 0 }
  0x12   : > { %p2029_p9 = pneg %p2443_p8  ;;  %s236_s15 = sshll.u32 %s2353_s14, 4  ;;  %s2455_s15 = int_to_ptr.vmem [resolvable:$true] %s236_s15 }
  0x13   : > { %p2195_p11 = scmp.ne.s32.totalorder %s2649_s1, %s2194_s18  ;;  %p2201_p3 = scmp.lt.u32.totalorder %s2194_s18, %s2649_s1 }
  0x14   : > { %p2451_p10 = pnand %p2029_p9, %p2656_p1 }
  0x16   : > { %p2196_p12 = pneg %p2451_p10 }
  0x18   : > { %p2197_p13 = pnand %p2196_p12, %p2195_p11 }
  0x1a   : > { %p2198_p0 = pneg %p2197_p13 }
  0x1c   : > { %p2203_p5 = pnand %p2201_p3, %p2198_p0 }
  0x1e   : > { %2206 = shalt.err (!%p2203_p5)
}
  0x1f   : > { %s2207_s23 = scalar_lea.vmem %s221_s12, 12544  ;;  %p2215_p2 = scmp.lt.s32.totalorder %s221_s12, %s221_s12 }
  0x20   : > { %p2208_p7 = scmp.ne.s32.totalorder %s221_s12, %s2207_s23  ;;  %p2216_p6 = scmp.lt.s32.totalorder %s2207_s23, %s2207_s23 }
  0x22   : > { %p2210_p9 = pnand %p2208_p7, %p2196_p12  ;;  %p2217_p4 = por %p2216_p6, %p2215_p2 }
  0x24   : > { %p2211_p1 = pneg %p2210_p9 }
  0x26   : > { %p2218_p8 = pnand %p2217_p4, %p2211_p1 }
  0x28   : > { %2221 = shalt.err (!%p2218_p8)
}
  0x29   : > { %s2354_s24 = smov 64   ;;  %s2355_s25 = smov 4  }
  0x2a   : > { %2032 = dma.hbm_to_vmem [thread:$0]  (!%p2451_p10), %s2649_s1, 12544, %s221_s12, [#allocation7], %s2354_s24, %s2354_s24, %s2355_s25  }
  0x2b   : > { %s2222_s17 = scalar_lea.hbm %s2651_s3, 1024 }
  0x2c   : > { %p2223_p11 = scmp.ne.s32.totalorder %s2651_s3, %s2222_s17  ;;  %p2229_p4 = scmp.lt.u32.totalorder %s2222_s17, %s2651_s3 }
  0x2e   : > { %p2225_p1 = pnand %p2223_p11, %p2196_p12 }
  0x30   : > { %p2226_p2 = pneg %p2225_p1 }
  0x32   : > { %p2231_p6 = pnand %p2229_p4, %p2226_p2 }
  0x34   : > { %2234 = shalt.err (!%p2231_p6)
}
  0x35   : > { %s2235_s12 = scalar_lea.vmem %s2455_s15, 1024  ;;  %p2243_p3 = scmp.lt.s32.totalorder %s2455_s15, %s2455_s15 }
  0x36   : > { %p2236_p8 = scmp.ne.s32.totalorder %s2455_s15, %s2235_s12  ;;  %p2244_p5 = scmp.lt.s32.totalorder %s2235_s12, %s2235_s12 }
  0x38   : > { %p2238_p13 = pnand %p2236_p8, %p2196_p12  ;;  %p2245_p7 = por %p2244_p5, %p2243_p3 }
  0x3a   : > { %p2239_p0 = pneg %p2238_p13 }
  0x3c   : > { %p2246_p9 = pnand %p2245_p7, %p2239_p0 }
  0x3e   : > { %2249 = shalt.err (!%p2246_p9)
}
  0x3f   : > { %2035 = dma.hbm_to_vmem [thread:$0]  (!%p2451_p10), %s2651_s3, 1024, %s2455_s15, [#allocation7], %s2354_s24, %s2354_s24, %s2355_s25  }
  0x40   : > { %s2505_s30 = sadd.s32 1, %s2350_s29   ;;  %s32_s13 = sadd.s32 1, %s2346_s28 }
  0x41   : > { %s29_s11 = ssub.s32 %s2350_s29, %s2505_s30  ;;  %p39_p12 = scmp.ne.s32.totalorder %s2346_s28, %s2342_s27 }
  0x42   : > { %p30_p11 = scmp.eq.s32.totalorder %s29_s11, 0  ;;  %p40_p1 = scmp.eq.s32.totalorder %s2350_s29, 0 }
  0x43   : > { %p2663_p2 = scmp.eq.s32.totalorder %s2424_s6, 2  ;;  %p2046_p6 = scmp.lt.s32.totalorder %s2350_s29, 3 }
  0x44   : > { %s2521_s16 = scalar_select %p30_p11, %s2346_s28, %s32_s13  }
  0x45   : > { %p2515_p4 = por %p2663_p2, %p39_p12  ;;  %p41_p8 = por %p40_p1, %p39_p12 }
  0x46   : > { %s259_s17 = sand.u32 1, %s2346_s28   ;;  %s2015_s15 = smul.u32 1664, %s2350_s29 }
  0x47   : > { %s2014_s18 = smul.u32 104, %s259_s17  ;;  %p2525_p10 = pnand %p2046_p6, %p41_p8 }
  0x48   : > { %s2532_s20 = scalar_lea.hbm %s2648_s0, %s2015_s15  ;;  %s260_s22 = scalar_lea.sflag [#allocation4], %s259_s17 }
  0x49   : > { %s263_s21 = scalar_lea.vmem [#allocation3], %s2014_s18  ;;  %s2250_s23 = scalar_lea.hbm %s2532_s20, 1664 }
  0x4a   : > { %s271_s12 = sshll.u32 %s263_s21, 4  ;;  %p2251_p13 = scmp.ne.s32.totalorder %s2532_s20, %s2250_s23  ;;  %s2534_s12 = int_to_ptr.vmem [resolvable:$true] %s271_s12 }
  0x4b   : > { %p2252_p0 = pneg %p2525_p10  ;;  %s2255_s15 = scalar_lea.hbm %s2648_s0, 4992 }
  0x4c   : > { %p2256_p7 = scmp.lt.u32.totalorder %s2532_s20, %s2648_s0  ;;  %p2257_p9 = scmp.lt.u32.totalorder %s2255_s15, %s2250_s23 }
  0x4d   : > { %p2253_p3 = pnand %p2252_p0, %p2251_p13  ;;  %p2259_p11 = scmp.lt.u32.totalorder %s2250_s23, %s2532_s20 }
  0x4e   : > { %p2258_p12 = por %p2257_p9, %p2256_p7 }
  0x4f   : > { %p2254_p5 = pneg %p2253_p3 }
  0x50   : > { %p2260_p1 = por %p2259_p11, %p2258_p12 }
  0x52   : > { %p2261_p2 = pnand %p2260_p1, %p2254_p5 }
  0x54   : > { %2264 = shalt.err (!%p2261_p2)
}
  0x55   : > { %s2265_s17 = scalar_lea.vmem %s2534_s12, 1664  ;;  %s2356_s18 = smov [#allocation3]  }
  0x56   : > { %p2266_p6 = scmp.ne.s32.totalorder %s2534_s12, %s2265_s17  ;;  %s2270_s21 = sshll.u32 %s2356_s18, 4  ;;  %s2271_s21 = int_to_ptr.vmem [resolvable:$false] %s2270_s21 }
  0x57   : > { %s2272_s13 = scalar_lea.vmem %s2271_s21, 3328  ;;  %p2273_p3 = scmp.lt.s32.totalorder %s2534_s12, %s2271_s21 }
  0x58   : > { %p2268_p8 = pnand %p2266_p6, %p2252_p0  ;;  %p2274_p7 = scmp.lt.s32.totalorder %s2272_s13, %s2265_s17 }
  0x5a   : > { %p2269_p13 = pneg %p2268_p8  ;;  %p2275_p9 = por %p2274_p7, %p2273_p3 }
  0x5c   : > { %p2276_p12 = pnand %p2275_p9, %p2269_p13 }
  0x5e   : > { %2279 = shalt.err (!%p2276_p12)
}
  0x5f   : > { %2039 = dma.hbm_to_vmem [thread:$0]  (!%p2525_p10), %s2532_s20, 1664, %s2534_s12, %s260_s22  }
  0x60   : > { %p2666_p5 = scmp.ne.s32.totalorder %s2661_s10, 0 }
  0x61   : > { %s2564_s23 = sand.u32 (!%p2666_p5), 1, %s2342_s27   ;;  %p2667_p0 = scmp.ne.s32.totalorder (!%p2666_p5), %s2659_s8, 0 }
  0x62   : > { %280 = sbr.rel (%p2666_p5) target bundleno = 880 (0x370), region = 48  ;;  %s283_s15 = scalar_lea.sflag (!%p2666_p5), [#allocation4], %s2564_s23 }
  0x63   : > { %s2016_s11 = smul.u32 (!%p2666_p5), 104, %s2564_s23 }
  0x65   : > { %s2568_s25 = scalar_lea.vmem (!%p2666_p5), [#allocation3], %s2016_s11 }
  0x69   : > { %2325 = dma.done.wait (%p2667_p0), %s283_s15, 1664  }
  0x6a   : > { %2327 = vsyncadd (%p2667_p0), %s283_s15, 4294965632  ;;  %p2668_p10 = scmp.eq.s32.totalorder %s2424_s6, 0 }
  0x6c   : > { %2329 = dma.done.wait (%p2668_p10), [#allocation7], 13568   ;;  %p2669_p11 = pmov %p2668_p10 }
  0x6d   : > { %v2088_v0 = vld [vmem:[#allocation6 + $0x40] sm:$0xff]   ;;  %v2092_v4 = vld [vmem:[#allocation6 + $0x48] sm:$0xff]   ;;  %v2096_v8 = vld [vmem:[#allocation6 + $0x50] sm:$0xff]   ;;  %vm2358_vm0 = vmmov 0   ;;  %vm1142_vm1 = vcmask 261120   ;;  %s1611_s19 = sld [smem:[#allocation2]] }
  0x6e   : > { %2331 = vsyncadd (%p2669_p11), [#allocation7], 4294953728  ;;  %v2089_v1 = vld [vmem:[#allocation6 + $0xc0] sm:$0xff]   ;;  %1835 = vmatprep.subr.bf16.mxu0 %v2088_v0  ;;  %v2093_v5 = vld [vmem:[#allocation6 + $0xc8] sm:$0xff]   ;;  %s1832_s17 = sshll.u32 %s2424_s6, 4  ;;  %s323_s18 = scalar_lea.vmem [#allocation9], %s2564_s23 }
  0x6f   : > { %v2090_v2 = vld [vmem:[#allocation6] sm:$0xff]   ;;  %1857 = vmatprep.subr.bf16.mxu1 %v2089_v1  ;;  %v2094_v6 = vld [vmem:[#allocation6 + $0x8] sm:$0xff]   ;;  %v2097_v9 = vld [vmem:[#allocation6 + $0xd0] sm:$0xff]   ;;  %s1629_s21 = sshll.u32 %s323_s18, 4  ;;  %vm1614_vm2 = vcmask 57344   ;;  %s2605_s15 = scalar_lea.hbm %s2655_s7, %s1832_s17  ;;  %s2607_s21 = int_to_ptr.vmem [resolvable:$true] %s1629_s21 }
  0x70   : > { %v2091_v3 = vld [vmem:[#allocation6 + $0x80] sm:$0xff]   ;;  %1836 = vmatpush3.bf16.msra.mxu0 %v2090_v2  ;;  %v2095_v7 = vld [vmem:[#allocation6 + $0x88] sm:$0xff]   ;;  %v2098_v10 = vld [vmem:[#allocation6 + $0x10] sm:$0xff]   ;;  %s2280_s8 = scalar_lea.vmem %s2607_s21, 16  ;;  %s2359_s6 = smov [#allocation9]  }
  0x71   : > { %1858 = vmatpush3.bf16.msra.mxu1 %v2091_v3  ;;  %1837 = vmatprep.subr.bf16.mxu0 %v2092_v4  ;;  %v2099_v11 = vld [vmem:[#allocation6 + $0x90] sm:$0xff]   ;;  %v2100_v12 = vld [vmem:[#allocation6 + $0x58] sm:$0xff]   ;;  %v2104_v16 = vld [vmem:[#allocation6 + $0x60] sm:$0xff]   ;;  %p2281_p1 = scmp.ne.s32.totalorder %s2607_s21, %s2280_s8  ;;  %s2284_s10 = sshll.u32 %s2359_s6, 4  ;;  %s2285_s10 = int_to_ptr.vmem [resolvable:$false] %s2284_s10 }
  0x72   : > { %1859 = vmatprep.subr.bf16.mxu1 %v2093_v5  ;;  %v2101_v13 = vld [vmem:[#allocation6 + $0xd8] sm:$0xff]   ;;  %v2105_v17 = vld [vmem:[#allocation6 + $0xe0] sm:$0xff]   ;;  %v2108_v20 = vld [vmem:[#allocation6 + $0x68] sm:$0xff]   ;;  %s2286_s24 = scalar_lea.vmem %s2285_s10, 32  ;;  %p2287_p8 = scmp.lt.s32.totalorder %s2607_s21, %s2285_s10 }
  0x73   : > { %v2102_v14 = vld [vmem:[#allocation6 + $0x18] sm:$0xff]   ;;  %v2106_v18 = vld [vmem:[#allocation6 + $0x20] sm:$0xff]   ;;  %v2109_v21 = vld [vmem:[#allocation6 + $0xe8] sm:$0xff]   ;;  %p2282_p2 = pnand %p2281_p1, %p2515_p4  ;;  %p2288_p13 = scmp.lt.s32.totalorder %s2286_s24, %s2280_s8 }
  0x74   : > { %1838 = vmatpush3.bf16.msra.mxu0 %v2094_v6  ;;  %v2103_v15 = vld [vmem:[#allocation6 + $0x98] sm:$0xff]   ;;  %v2107_v19 = vld [vmem:[#allocation6 + $0xa0] sm:$0xff]   ;;  %v2110_v22 = vld [vmem:[#allocation6 + $0x28] sm:$0xff]  }
  0x75   : > { %1860 = vmatpush3.bf16.msra.mxu1 %v2095_v7  ;;  %1839 = vmatprep.subr.bf16.mxu0 %v2096_v8  ;;  %v2111_v23 = vld [vmem:[#allocation6 + $0xa8] sm:$0xff]   ;;  %v2112_v24 = vld [vmem:[#allocation6 + $0x70] sm:$0xff]   ;;  %v2116_v28 = vld [vmem:[#allocation6 + $0x78] sm:$0xff]   ;;  %p2283_p6 = pneg %p2282_p2  ;;  %p2289_p3 = por %p2288_p13, %p2287_p8 }
  0x76   : > { %1861 = vmatprep.subr.bf16.mxu1 %v2097_v9  ;;  %v2113_v25 = vld [vmem:[#allocation6 + $0xf0] sm:$0xff]   ;;  %v2117_v29 = vld [vmem:[#allocation6 + $0xf8] sm:$0xff]   ;;  %v2120_v38 = vld [vmem:[#allocation6 + $0x140] sm:$0xff]  }
  0x77   : > { %v2114_v26 = vld [vmem:[#allocation6 + $0x30] sm:$0xff]   ;;  %v2118_v30 = vld [vmem:[#allocation6 + $0x38] sm:$0xff]   ;;  %v2121_v39 = vld [vmem:[#allocation6 + $0x1c0] sm:$0xff]   ;;  %p2290_p7 = pnand %p2289_p3, %p2283_p6 }
  0x78   : > { %1840 = vmatpush3.bf16.msra.mxu0 %v2098_v10  ;;  %v2115_v27 = vld [vmem:[#allocation6 + $0xb0] sm:$0xff]   ;;  %v2119_v31 = vld [vmem:[#allocation6 + $0xb8] sm:$0xff]   ;;  %v327_v40 = vld [vmem:[%s2568_s25 + $0x10] sm:$0xff] }
  0x79   : > { %1862 = vmatpush3.bf16.msra.mxu1 %v2099_v11  ;;  %1841 = vmatprep.subr.bf16.mxu0 %v2100_v12  ;;  %v326_v32 = vld [vmem:[%s2568_s25 + $0x8] sm:$0xff]  ;;  %v325_v33 = vld [vmem:[%s2568_s25] sm:$0xff]  ;;  %v328_v34 = vld [vmem:[%s2568_s25 + $0x18] sm:$0xff]  ;;  %v340_v41 = vpack.c.bf16 %v327_v40, %v327_v40 }
  0x7a   : > { %1863 = vmatprep.subr.bf16.mxu1 %v2101_v13  ;;  %v339_v35 = vpack.c.bf16 %v326_v32, %v326_v32  ;;  %v338_v36 = vpack.c.bf16 %v325_v33, %v325_v33  ;;  %v341_v37 = vpack.c.bf16 %v328_v34, %v328_v34  ;;  %v2122_v42 = vld [vmem:[#allocation6 + $0x100] sm:$0xff]   ;;  %v2124_v44 = vld [vmem:[#allocation6 + $0x148] sm:$0xff]   ;;  %v2128_v48 = vld [vmem:[#allocation6 + $0x150] sm:$0xff]  }
  0x7b   : > { %v2123_v43 = vld [vmem:[#allocation6 + $0x180] sm:$0xff]   ;;  %v2125_v45 = vld [vmem:[#allocation6 + $0x1c8] sm:$0xff]   ;;  %v2129_v49 = vld [vmem:[#allocation6 + $0x1d0] sm:$0xff]  }
  0x7c   : > { %1842 = vmatpush3.bf16.msra.mxu0 %v2102_v14  ;;  %1178 = vmatprep.mubr.bf16.mxu0 %v339_v35  ;;  %v2126_v46 = vld [vmem:[#allocation6 + $0x108] sm:$0xff]   ;;  %v2130_v50 = vld [vmem:[#allocation6 + $0x110] sm:$0xff]   ;;  %v2132_v52 = vld [vmem:[#allocation6 + $0x158] sm:$0xff]  }
  0x7d   : > { %1864 = vmatpush3.bf16.msra.mxu1 %v2103_v15  ;;  %1843 = vmatprep.subr.bf16.mxu0 %v2104_v16  ;;  %v2127_v47 = vld [vmem:[#allocation6 + $0x188] sm:$0xff]   ;;  %v2131_v51 = vld [vmem:[#allocation6 + $0x190] sm:$0xff]   ;;  %v2133_v53 = vld [vmem:[#allocation6 + $0x1d8] sm:$0xff]  }
  0x7e   : > { %1865 = vmatprep.subr.bf16.mxu1 %v2105_v17  ;;  %1218 = vmatprep.mubr.bf16.mxu1 %v341_v37  ;;  %v2134_v54 = vld [vmem:[#allocation6 + $0x118] sm:$0xff]   ;;  %v2136_v56 = vld [vmem:[#allocation6 + $0x160] sm:$0xff]   ;;  %v2140_v60 = vld [vmem:[#allocation6 + $0x168] sm:$0xff]  }
  0x7f   : > { %v2135_v55 = vld [vmem:[#allocation6 + $0x198] sm:$0xff]   ;;  %v2137_v57 = vld [vmem:[#allocation6 + $0x1e0] sm:$0xff]   ;;  %v2141_v61 = vld [vmem:[#allocation6 + $0x1e8] sm:$0xff]  }
  0x80   : > { %1844 = vmatpush3.bf16.msra.mxu0 %v2106_v18  ;;  %v2138_v58 = vld [vmem:[#allocation6 + $0x120] sm:$0xff]   ;;  %v2142_v62 = vld [vmem:[#allocation6 + $0x128] sm:$0xff]   ;;  %v2144_v0 = vld [vmem:[#allocation6 + $0x170] sm:$0xff]  }
  0x81   : > { %1866 = vmatpush3.bf16.msra.mxu1 %v2107_v19  ;;  %1845 = vmatprep.subr.bf16.mxu0 %v2108_v20  ;;  %v2139_v59 = vld [vmem:[#allocation6 + $0x1a0] sm:$0xff]   ;;  %v2143_v63 = vld [vmem:[#allocation6 + $0x1a8] sm:$0xff]   ;;  %v2145_v1 = vld [vmem:[#allocation6 + $0x1f0] sm:$0xff]  }
  0x82   : > { %1867 = vmatprep.subr.bf16.mxu1 %v2109_v21  ;;  %v2146_v2 = vld [vmem:[#allocation6 + $0x130] sm:$0xff]   ;;  %v2148_v4 = vld [vmem:[#allocation6 + $0x178] sm:$0xff]   ;;  %v2152_v14 = vld [vmem:[#allocation6 + $0x240] sm:$0xff]  }
  0x83   : > { %v2147_v3 = vld [vmem:[#allocation6 + $0x1b0] sm:$0xff]   ;;  %v2149_v5 = vld [vmem:[#allocation6 + $0x1f8] sm:$0xff]   ;;  %v2153_v15 = vld [vmem:[#allocation6 + $0x2c0] sm:$0xff]  }
  0x84   : > { %1846 = vmatpush3.bf16.msra.mxu0 %v2110_v22  ;;  %v2150_v6 = vld [vmem:[#allocation6 + $0x138] sm:$0xff]   ;;  %v332_v12 = vld [vmem:[%s2568_s25 + $0x38] sm:$0xff]  ;;  %v331_v16 = vld [vmem:[%s2568_s25 + $0x30] sm:$0xff] }
  0x85   : > { %1868 = vmatpush3.bf16.msra.mxu1 %v2111_v23  ;;  %1847 = vmatprep.subr.bf16.mxu0 %v2112_v24  ;;  %v2151_v7 = vld [vmem:[#allocation6 + $0x1b8] sm:$0xff]   ;;  %v345_v13 = vpack.c.bf16 %v332_v12, %v332_v12  ;;  %v344_v17 = vpack.c.bf16 %v331_v16, %v331_v16  ;;  %v2154_v18 = vld [vmem:[#allocation6 + $0x200] sm:$0xff]   ;;  %v2156_v20 = vld [vmem:[#allocation6 + $0x248] sm:$0xff]  }
  0x86   : > { %1869 = vmatprep.subr.bf16.mxu1 %v2113_v25  ;;  %v330_v8 = vld [vmem:[%s2568_s25 + $0x28] sm:$0xff]  ;;  %v329_v9 = vld [vmem:[%s2568_s25 + $0x20] sm:$0xff]  ;;  %v2157_v21 = vld [vmem:[#allocation6 + $0x2c8] sm:$0xff]  }
  0x87   : > { %v343_v10 = vpack.c.bf16 %v330_v8, %v330_v8  ;;  %v342_v11 = vpack.c.bf16 %v329_v9, %v329_v9  ;;  %v2155_v19 = vld [vmem:[#allocation6 + $0x280] sm:$0xff]   ;;  %v2158_v22 = vld [vmem:[#allocation6 + $0x208] sm:$0xff]   ;;  %v2160_v24 = vld [vmem:[#allocation6 + $0x250] sm:$0xff]  }
  0x88   : > { %1848 = vmatpush3.bf16.msra.mxu0 %v2114_v26  ;;  %v2159_v23 = vld [vmem:[#allocation6 + $0x288] sm:$0xff]   ;;  %v2161_v25 = vld [vmem:[#allocation6 + $0x2d0] sm:$0xff]   ;;  %v2168_v32 = vld [vmem:[#allocation6 + $0x260] sm:$0xff]  }
  0x89   : > { %1870 = vmatpush3.bf16.msra.mxu1 %v2115_v27  ;;  %1849 = vmatprep.subr.bf16.mxu0 %v2116_v28  ;;  %v2162_v26 = vld [vmem:[#allocation6 + $0x210] sm:$0xff]   ;;  %v2164_v28 = vld [vmem:[#allocation6 + $0x258] sm:$0xff]   ;;  %v2169_v33 = vld [vmem:[#allocation6 + $0x2e0] sm:$0xff]  }
  0x8a   : > { %1871 = vmatprep.subr.bf16.mxu1 %v2117_v29  ;;  %v2163_v27 = vld [vmem:[#allocation6 + $0x290] sm:$0xff]   ;;  %v2165_v29 = vld [vmem:[#allocation6 + $0x2d8] sm:$0xff]   ;;  %v2170_v34 = vld [vmem:[#allocation6 + $0x220] sm:$0xff]  }
  0x8b   : > { %v2171_v35 = vld [vmem:[#allocation6 + $0x2a0] sm:$0xff]   ;;  %v2173_v37 = vld [vmem:[#allocation6 + $0x2e8] sm:$0xff]   ;;  %v2176_v40 = vld [vmem:[#allocation6 + $0x270] sm:$0xff]  }
  0x8c   : > { %1850 = vmatpush3.bf16.msra.mxu0 %v2118_v30  ;;  %v2166_v30 = vld [vmem:[#allocation6 + $0x218] sm:$0xff]  }
  0x8d   : > { %1872 = vmatpush3.bf16.msra.mxu1 %v2119_v31  ;;  %1879 = vmatprep.subr.bf16.mxu0 %v2120_v38  ;;  %v2167_v31 = vld [vmem:[#allocation6 + $0x298] sm:$0xff]   ;;  %v2174_v38 = vld [vmem:[#allocation6 + $0x228] sm:$0xff]  }
  0x8e   : > { %1901 = vmatprep.subr.bf16.mxu1 %v2121_v39  ;;  %v2175_v39 = vld [vmem:[#allocation6 + $0x2a8] sm:$0xff]  }
  0x8f   : > { %1179 = vmatmul.mubr.bf16.vlgmr.msra.gmra.mrb[0].mxu0 %v338_v36  ;;  %v2172_v36 = vld [vmem:[#allocation6 + $0x268] sm:$0xff]  }
  0x90   : > { %1219 = vmatmul.mubr.bf16.vlgmr.msra.gmra.mrb[0].mxu1 %v340_v41  ;;  %1880 = vmatpush3.bf16.msra.mxu0 %v2122_v42  ;;  %v2177_v41 = vld [vmem:[#allocation6 + $0x2f0] sm:$0xff]  }
  0x91   : > { %1902 = vmatpush3.bf16.msra.mxu1 %v2123_v43  ;;  %1881 = vmatprep.subr.bf16.mxu0 %v2124_v44  ;;  %v2178_v42 = vld [vmem:[#allocation6 + $0x230] sm:$0xff]   ;;  %v2180_v44 = vld [vmem:[#allocation6 + $0x278] sm:$0xff]  }
  0x92   : > { %1903 = vmatprep.subr.bf16.mxu1 %v2125_v45  ;;  %1258 = vmatprep.mubr.bf16.mxu0 %v343_v10  ;;  %v2179_v43 = vld [vmem:[#allocation6 + $0x2b0] sm:$0xff]   ;;  %v2181_v45 = vld [vmem:[#allocation6 + $0x2f8] sm:$0xff]  }
  0x93   : > { %1298 = vmatprep.mubr.bf16.mxu1 %v345_v13 }
  0x94   : > { %1882 = vmatpush3.bf16.msra.mxu0 %v2126_v46  ;;  %v2182_v46 = vld [vmem:[#allocation6 + $0x238] sm:$0xff]  }
  0x95   : > { %1904 = vmatpush3.bf16.msra.mxu1 %v2127_v47  ;;  %1883 = vmatprep.subr.bf16.mxu0 %v2128_v48  ;;  %v2183_v47 = vld [vmem:[#allocation6 + $0x2b8] sm:$0xff]  }
  0x96   : > { %1905 = vmatprep.subr.bf16.mxu1 %v2129_v49  ;;  %v334_v48 = vld [vmem:[%s2568_s25 + $0x48] sm:$0xff] }
  0x97   : > { %v347_v49 = vpack.c.bf16 %v334_v48, %v334_v48 }
  0x98   : > { %1884 = vmatpush3.bf16.msra.mxu0 %v2130_v50  ;;  %v336_v50 = vld [vmem:[%s2568_s25 + $0x58] sm:$0xff] }
  0x99   : > { %1906 = vmatpush3.bf16.msra.mxu1 %v2131_v51  ;;  %1885 = vmatprep.subr.bf16.mxu0 %v2132_v52  ;;  %v333_v51 = vld [vmem:[%s2568_s25 + $0x40] sm:$0xff]  ;;  %v335_v52 = vld [vmem:[%s2568_s25 + $0x50] sm:$0xff] }
  0x9a   : > { %1907 = vmatprep.subr.bf16.mxu1 %v2133_v53  ;;  %v349_v53 = vpack.c.bf16 %v336_v50, %v336_v50 }
  0x9c   : > { %1886 = vmatpush3.bf16.msra.mxu0 %v2134_v54  ;;  %v346_v54 = vpack.c.bf16 %v333_v51, %v333_v51 }
  0x9d   : > { %1908 = vmatpush3.bf16.msra.mxu1 %v2135_v55  ;;  %1887 = vmatprep.subr.bf16.mxu0 %v2136_v56  ;;  %v348_v55 = vpack.c.bf16 %v335_v52, %v335_v52  ;;  %v2357_v56 = vmov 0.0  }
  0x9e   : > { %1909 = vmatprep.subr.bf16.mxu1 %v2137_v57  ;;  %v2184_v57 = vld [vmem:[#allocation6 + $0x300] sm:$0xff]  }
  0xa0   : > { %1888 = vmatpush3.bf16.msra.mxu0 %v2138_v58  ;;  %v2185_v58 = vld [vmem:[#allocation6 + $0x308] sm:$0xff]  }
  0xa1   : > { %1910 = vmatpush3.bf16.msra.mxu1 %v2139_v59  ;;  %1889 = vmatprep.subr.bf16.mxu0 %v2140_v60  ;;  %v337_v59 = vld [vmem:[%s2568_s25 + $0x60] sm:$0xff]  ;;  %s1617_s25 = scalar_lea.sflag [#allocation5], %s2564_s23 }
  0xa2   : > { %1911 = vmatprep.subr.bf16.mxu1 %v2141_v61  ;;  %v350_v60 = vpack.c.bf16 %v337_v59, %v337_v59  ;;  %v2186_v61 = vld [vmem:[#allocation8] sm:$0xff]  }
  0xa4   : > { %1890 = vmatpush3.bf16.msra.mxu0 %v2142_v62  ;;  %v2187_v62 = vld [vmem:[#allocation8 + $0x8] sm:$0xff]  }
  0xa5   : > { %1912 = vmatpush3.bf16.msra.mxu1 %v2143_v63  ;;  %1891 = vmatprep.subr.bf16.mxu0 %v2144_v0  ;;  %v2188_v63 = vld [vmem:[#allocation8 + $0x10] sm:$0xff]   ;;  %v2189_v0 = vld [vmem:[#allocation8 + $0x18] sm:$0xff]  }
  0xa6   : > { %1913 = vmatprep.subr.bf16.mxu1 %v2145_v1  ;;  %v2190_v1 = vld [vmem:[#allocation8 + $0x20] sm:$0xff]  }
  0xa8   : > { %1892 = vmatpush3.bf16.msra.mxu0 %v2146_v2  ;;  %v2191_v2 = vld [vmem:[#allocation8 + $0x28] sm:$0xff]  }
  0xa9   : > { %1914 = vmatpush3.bf16.msra.mxu1 %v2147_v3  ;;  %1893 = vmatprep.subr.bf16.mxu0 %v2148_v4  ;;  %v2192_v3 = vld [vmem:[#allocation8 + $0x30] sm:$0xff]   ;;  %v2193_v4 = vld [vmem:[#allocation8 + $0x38] sm:$0xff]  }
  0xaa   : > { %1915 = vmatprep.subr.bf16.mxu1 %v2149_v5 }
  0xac   : > { %1894 = vmatpush3.bf16.msra.mxu0 %v2150_v6  ;;  %v1723_v6 = vld [vmem:[%s2650_s2] ss:$0 sm:$0xff] }
  0xad   : > { %1916 = vmatpush3.bf16.msra.mxu1 %v2151_v7  ;;  %1923 = vmatprep.subr.bf16.mxu0 %v2152_v14 }
  0xae   : > { %1945 = vmatprep.subr.bf16.mxu1 %v2153_v15 }
  0xaf   : > { %1259 = vmatmul.mubr.bf16.vlgmr.msra.gmra.mrb[4].mxu0 %v342_v11 }
  0xb0   : > { %1299 = vmatmul.mubr.bf16.vlgmr.msra.gmra.mrb[4].mxu1 %v344_v17  ;;  %1924 = vmatpush3.bf16.msra.mxu0 %v2154_v18 }
  0xb1   : > { %1946 = vmatpush3.bf16.msra.mxu1 %v2155_v19  ;;  %1925 = vmatprep.subr.bf16.mxu0 %v2156_v20 }
  0xb2   : > { %1947 = vmatprep.subr.bf16.mxu1 %v2157_v21  ;;  %1338 = vmatprep.mubr.bf16.mxu0 %v347_v49  ;;  %v1823_v49 = vld [vmem:[%s2652_s4] ss:$0 sm:$0xff] }
  0xb3   : > { %1378 = vmatprep.mubr.bf16.mxu1 %v349_v53 }
  0xb4   : > { %1926 = vmatpush3.bf16.msra.mxu0 %v2158_v22 }
  0xb5   : > { %1948 = vmatpush3.bf16.msra.mxu1 %v2159_v23  ;;  %1927 = vmatprep.subr.bf16.mxu0 %v2160_v24 }
  0xb6   : > { %1949 = vmatprep.subr.bf16.mxu1 %v2161_v25 }
  0xb8   : > { %1928 = vmatpush3.bf16.msra.mxu0 %v2162_v26 }
  0xb9   : > { %1950 = vmatpush3.bf16.msra.mxu1 %v2163_v27  ;;  %1929 = vmatprep.subr.bf16.mxu0 %v2164_v28 }
  0xba   : > { %1951 = vmatprep.subr.bf16.mxu1 %v2165_v29 }
  0xbc   : > { %1930 = vmatpush3.bf16.msra.mxu0 %v2166_v30 }
  0xbd   : > { %1952 = vmatpush3.bf16.msra.mxu1 %v2167_v31  ;;  %1931 = vmatprep.subr.bf16.mxu0 %v2168_v32 }
  0xbe   : > { %1953 = vmatprep.subr.bf16.mxu1 %v2169_v33 }
  0xc0   : > { %1932 = vmatpush3.bf16.msra.mxu0 %v2170_v34 }
  0xc1   : > { %1954 = vmatpush3.bf16.msra.mxu1 %v2171_v35  ;;  %1933 = vmatprep.subr.bf16.mxu0 %v2172_v36 }
  0xc2   : > { %1955 = vmatprep.subr.bf16.mxu1 %v2173_v37 }
  0xc4   : > { %1934 = vmatpush3.bf16.msra.mxu0 %v2174_v38 }
  0xc5   : > { %1956 = vmatpush3.bf16.msra.mxu1 %v2175_v39  ;;  %1935 = vmatprep.subr.bf16.mxu0 %v2176_v40 }
  0xc6   : > { %1957 = vmatprep.subr.bf16.mxu1 %v2177_v41 }
  0xc8   : > { %1936 = vmatpush3.bf16.msra.mxu0 %v2178_v42 }
  0xc9   : > { %1958 = vmatpush3.bf16.msra.mxu1 %v2179_v43  ;;  %1937 = vmatprep.subr.bf16.mxu0 %v2180_v44 }
  0xca   : > { %1959 = vmatprep.subr.bf16.mxu1 %v2181_v45 }
  0xcc   : > { %1938 = vmatpush3.bf16.msra.mxu0 %v2182_v46 }
  0xcd   : > { %1960 = vmatpush3.bf16.msra.mxu1 %v2183_v47  ;;  %1981 = vmatprep.subr.bf16.mxu0 %v2357_v56 }
  0xce   : > { %1989 = vmatprep.subr.bf16.mxu1 %v2357_v56 }
  0xcf   : > { %1339 = vmatmul.mubr.bf16.vlgmr.msra.gmra.mrb[8].mxu0 %v346_v54 }
  0xd0   : > { %1379 = vmatmul.mubr.bf16.vlgmr.msra.gmra.mrb[8].mxu1 %v348_v55  ;;  %1982 = vmatpush3.bf16.msra.mxu0 %v2184_v57  ;;  %v1612_v57 = vstv %s1611_s19 }
  0xd1   : > { %1983 = vmatprep.subr.bf16.mxu0 %v2357_v56  ;;  %1985 = vmatprep.mubr.msk.bf16.mxu0 %vm2358_vm0, %v2357_v56 }
  0xd2   : > { %2005 = vmatprep.mubr.msk.bf16.mxu1 %vm2358_vm0, %v2357_v56  ;;  %1990 = vmatpush3.bf16.msra.mxu1 %v2186_v61 }
  0xd3   : > { %1991 = vmatprep.subr.bf16.mxu1 %v2357_v56 }
  0xd4   : > { %1984 = vmatpush3.bf16.msra.mxu0 %v2185_v58 }
  0xd5   : > { %2009 = vmatprep.subr.mxu0 %v2357_v56 }
  0xd6   : > { %1992 = vmatpush3.bf16.msra.mxu1 %v2187_v62 }
  0xd7   : > { %1986 = vmatmul.mubr.msk.bf16.vlgmr.msra.gmra.mrb[12].mxu0 %vm1142_vm1, %v350_v60  ;;  %1993 = vmatprep.subr.bf16.mxu1 %v2357_v56 }
  0xd8   : > { %2011 = vmatprep.mubr.msk.f32.mxu0 %vm2358_vm0, %v2357_v56 }
  0xda   : > { %1994 = vmatpush3.bf16.msra.mxu1 %v2188_v63 }
  0xdb   : > { %1995 = vmatprep.subr.bf16.mxu1 %v2357_v56 }
  0xde   : > { %1996 = vmatpush3.bf16.msra.mxu1 %v2189_v0 }
  0xdf   : > { %1997 = vmatprep.subr.bf16.mxu1 %v2357_v56 }
  0xe2   : > { %1998 = vmatpush3.bf16.msra.mxu1 %v2190_v1 }
  0xe3   : > { %1999 = vmatprep.subr.bf16.mxu1 %v2357_v56 }
  0xe6   : > { %2000 = vmatpush3.bf16.msra.mxu1 %v2191_v2 }
  0xe7   : > { %2001 = vmatprep.subr.bf16.mxu1 %v2357_v56 }
  0xea   : > { %2002 = vmatpush3.bf16.msra.mxu1 %v2192_v3 }
  0xeb   : > { %2003 = vmatprep.subr.bf16.mxu1 %v2357_v56  ;;  %v1540_v56 = vld [vmem:[%s2653_s5] sm:$0xff] }
  0xee   : > { %2004 = vmatpush3.bf16.msra.mxu1 %v2193_v4 }
 0x162   : > { %v1851_v5 = vpop.f32.mrb[0].mxu0 }
 0x163   : > { %v1852_v7 = vpop.f32.mrb[1].mxu0  ;;  %v1873_v9 = vpop.f32.mrb[0].mxu1 }
 0x164   : > { %v1853_v8 = vadd.f32 %v1852_v7, %v1851_v5  ;;  %v1854_v10 = vpop.f32.mrb[2].mxu0  ;;  %v1874_v11 = vpop.f32.mrb[1].mxu1 }
 0x165   : > { %v1855_v12 = vpop.f32.mrb[3].mxu0  ;;  %v1875_v14 = vadd.f32 %v1874_v11, %v1873_v9  ;;  %v1876_v15 = vpop.f32.mrb[2].mxu1 }
 0x166   : > { %v1181_v13 = vadd.f32 %v1853_v8, %v1723_v6  ;;  %v1877_v16 = vpop.f32.mrb[3].mxu1 }
 0x168   : > { %v1221_v17 = vadd.f32 %v1875_v14, %v1181_v13 }
 0x182   : > { %v1895_v18 = vpop.f32.mrb[4].mxu0 }
 0x183   : > { %v1896_v19 = vpop.f32.mrb[5].mxu0  ;;  %v1917_v21 = vpop.f32.mrb[4].mxu1 }
 0x184   : > { %v1897_v20 = vadd.f32 %v1896_v19, %v1895_v18  ;;  %v1898_v22 = vpop.f32.mrb[6].mxu0  ;;  %v1918_v23 = vpop.f32.mrb[5].mxu1 }
 0x185   : > { %v1899_v24 = vpop.f32.mrb[7].mxu0  ;;  %v1919_v26 = vadd.f32 %v1918_v23, %v1917_v21  ;;  %v1920_v27 = vpop.f32.mrb[6].mxu1 }
 0x186   : > { %v1261_v25 = vadd.f32 %v1897_v20, %v1221_v17  ;;  %v1921_v28 = vpop.f32.mrb[7].mxu1 }
 0x188   : > { %v1301_v29 = vadd.f32 %v1919_v26, %v1261_v25 }
 0x1a2   : > { %v1939_v30 = vpop.f32.mrb[8].mxu0 }
 0x1a3   : > { %v1961_v31 = vpop.f32.mrb[8].mxu1  ;;  %v1940_v32 = vpop.f32.mrb[9].mxu0 }
 0x1a4   : > { %v1941_v33 = vadd.f32 %v1940_v32, %v1939_v30  ;;  %v1962_v34 = vpop.f32.mrb[9].mxu1  ;;  %v1942_v35 = vpop.f32.mrb[10].mxu0 }
 0x1a5   : > { %v1963_v36 = vadd.f32 %v1962_v34, %v1961_v31  ;;  %v1964_v37 = vpop.f32.mrb[10].mxu1  ;;  %v1943_v38 = vpop.f32.mrb[11].mxu0 }
 0x1a6   : > { %v1341_v39 = vadd.f32 %v1941_v33, %v1301_v29  ;;  %v1965_v40 = vpop.f32.mrb[11].mxu1 }
 0x1a8   : > { %v1381_v41 = vadd.f32 %v1963_v36, %v1341_v39 }
 0x1aa   : > { %v1420_v42 = vpop.f32.mrb[12].mxu0 }
 0x1ab   : > { %v1421_v43 = vadd.f32 %v1420_v42, %v1381_v41  ;;  %v1987_v44 = vpop.f32.mrb[13].mxu0 }
 0x1ac   : > { %v1423_v45 = vpop.f32.mrb[14].mxu0 }
 0x1ad   : > { %v1426_v46 = vmax.f32 %v1421_v43, 0.0  ;;  %v1988_v47 = vpop.f32.mrb[15].mxu0 }
 0x1af   : > { %v1427_v48 = vpack.c.bf16 %v1426_v46, %v1426_v46 }
 0x1b1   : > { %2006 = vmatmul.mubr.bf16.vlgmr.msra.gmra.mrb[12].mxu1 %v1427_v48 }
 0x284   : > { %v1533_v50 = vpop.f32.mrb[12].mxu1 }
 0x285   : > { %v1534_v51 = vadd.f32 %v1823_v49, %v1533_v50  ;;  %v2007_v52 = vpop.f32.mrb[13].mxu1 }
 0x286   : > { %v1536_v53 = vpop.f32.mrb[14].mxu1 }
 0x287   : > { %v1539_v54 = vmax.f32 %v1534_v51, 0.0  ;;  %v2008_v55 = vpop.f32.mrb[15].mxu1 }
 0x289   : > { %2010 = vmatpush3.xpose.msra.mxu0 %v1539_v54 }
 0x28c   : > { %2012 = vmatmul.mubr.f32.vlgmr.msra.gmra.mrb[16].mxu0 %v1540_v56 }
 0x35f   : > { %v1607_v58 = vpop.f32.mrb[16].mxu0 }
 0x360   : > { %v1613_v59 = vadd.f32 %v1612_v57, %v1607_v58  ;;  %v2013_v60 = vpop.f32.mrb[17].mxu0 }
 0x362   : > { %1615 = vst.msk [vmem:[%s323_s18] sm:$0x1] %vm1614_vm2, %v1613_v59 }
 0x363   : > { %2293 = shalt.err (!%p2290_p7)
}
 0x364   : > { %s2294_s23 = scalar_lea.hbm %s2605_s15, 16  ;;  %s2298_s22 = scalar_lea.hbm %s2655_s7, 48 }
 0x365   : > { %p2295_p9 = scmp.ne.s32.totalorder %s2605_s15, %s2294_s23  ;;  %p2299_p0 = scmp.lt.u32.totalorder %s2605_s15, %s2655_s7 }
 0x366   : > { %p2300_p10 = scmp.lt.u32.totalorder %s2298_s22, %s2294_s23  ;;  %p2302_p1 = scmp.lt.u32.totalorder %s2294_s23, %s2605_s15 }
 0x367   : > { %p2296_p12 = pnand %p2295_p9, %p2515_p4 }
 0x368   : > { %p2301_p11 = por %p2300_p10, %p2299_p0 }
 0x369   : > { %p2297_p5 = pneg %p2296_p12 }
 0x36a   : > { %p2303_p2 = por %p2302_p1, %p2301_p11 }
 0x36c   : > { %p2304_p6 = pnand %p2303_p2, %p2297_p5 }
 0x36e   : > { %2307 = shalt.err (!%p2304_p6)
}
 0x36f   : > { %2027 = dma.vmem_to_hbm [thread:$0]  (%p2515_p4), %s2607_s21, 16, %s2605_s15, %s1617_s25  }
 0x370 PF: > { %p2049_p8 = scmp.ge.s32.totalorder %s2350_s29, 2  ;;  %s1641_s18 = sand.u32 1, %s2338_s26  }
 0x371   : > { %p2670_p13 = scmp.ne.s32.totalorder %s2660_s9, 0  ;;  %s1642_s13 = scalar_lea.sflag [#allocation5], %s1641_s18 }
 0x373   : > { %p2041_p3 = pnand %p2049_p8, %p2670_p13 }
 0x375   : > { %2333 = dma.done.wait (!%p2041_p3), %s1642_s13, 16  }
 0x376   : > { %2335 = vsyncadd (!%p2041_p3), %s1642_s13, 4294967280  ;;  %p22_p7 = scmp.ge.s32.totalorder %s2505_s30, 5   ;;  %s2671_s26 = smov %s2342_s27 }
 0x377   : > { %s2672_s27 = smov %s2346_s28  ;;  %s2673_s28 = smov %s2521_s16 }
 0x378   : > { %s2674_s29 = smov %s2505_s30  ;;  %24 = sbr.rel (!%p22_p7) target bundleno = 8 (0x8), region = 101 }
 0x37f   :  { %1646 = vsyncpa [#allocation4], 1 }
 0x380   :  { %1648 = vsyncpa [#allocation4 + $0x1], 1 }
 0x381   :  { %1649 = vsyncpa [#allocation7], 1 }
 0x382   :  { %1650 = vsyncpa [#allocation5], 1 }
 0x383   :  { %1652 = vsyncpa [#allocation5 + $0x1], 1 }

</bundles_post_ra>
